<compile_context>
chip_gen: v5e
topology: v5e:2x2
jax: 0.10.0
libtpu: 0.0.40
codegen_flags: <defaults>
</compile_context>

<pallas_src>
import jax
import jax.numpy as jnp
from jax.experimental import pallas as pl
from jax.experimental.pallas import tpu as pltpu

IN_DIM = 2
HID = 32
OUT_DIM = 1


def mlp_kernel(xT_ref, w1_ref, b1_ref, w2_ref, b2_ref, w3T_ref, b3_ref, o_ref):
    # xT_ref : (2, TM)        batch on lanes, features on sublanes
    # w1_ref : (32, 2)   b1_ref: (32, 1)
    # w2_ref : (32, 32)  b2_ref: (32, 1)
    # w3T_ref: (1, 32)   b3_ref: (1, 1)
    # o_ref  : (1, TM)        lane-dense output block
    xT = xT_ref[...]  # (2, TM)

    # fc1 on the MXU: (32, 2) @ (2, TM) -> (32, TM). K=2 wastes most of the
    # systolic array, but the MXU has huge slack and this avoids the
    # sublane/lane broadcasts the hand-rolled FMA version needed.
    h1 = jnp.dot(w1_ref[...], xT, preferred_element_type=jnp.float32) + b1_ref[...]

    # Sigmoid via one EUP tanh push (cheaper than exp + precise divide).
    h1 = 0.5 * jnp.tanh(0.5 * h1) + 0.5  # (32, TM)

    # fc2 on the MXU: (32, 32) @ (32, TM).
    h2 = jnp.dot(w2_ref[...], h1, preferred_element_type=jnp.float32) + b2_ref[...]
    h2 = jnp.maximum(h2, 0.0)  # (32, TM)

    # fc3 on the MXU: (1, 32) @ (32, TM) -> (1, TM). Replaces the VPU
    # multiply + XLU cross-sublane reduction.
    out = jnp.dot(w3T_ref[...], h2, preferred_element_type=jnp.float32) + b3_ref[...]
    o_ref[...] = out.astype(o_ref.dtype)


def _pick_tm(n, tm_cap):
    """Pick a lane-tile size: multiple of 128, <= tm_cap, and keep the grid
    length >= 2 when the batch allows (v7x shards the 'parallel' axis across
    its two TensorCores; a grid of length 1 leaves one TC idle)."""
    n128 = ((max(n, 1) + 127) // 128) * 128
    tm = min(((tm_cap + 127) // 128) * 128, n128)
    if n128 >= 256 and n128 // tm < 2:
        tm = ((n128 // 2 + 127) // 128) * 128
    return tm


def mlp_forward(x, params, *, tm=4096):
    """x: (N, 2) float32. Returns (N, 1) float32."""
    w1, b1, w2, b2, w3T, b3 = params
    N = x.shape[0]
    tm_eff = _pick_tm(N, tm)
    n_blocks = pl.cdiv(N, tm_eff)
    n_pad = n_blocks * tm_eff

    # Batch-on-lanes layout; pad only if the batch isn't a tile multiple
    # (single jnp.pad, no zeros + dynamic-update-slice round trip).
    xT = x.T  # (2, N)
    if n_pad != N:
        xT = jnp.pad(xT, ((0, 0), (0, n_pad - N)))

    out_t = pl.pallas_call(
        mlp_kernel,
        out_shape=jax.ShapeDtypeStruct((OUT_DIM, n_pad), jnp.float32),
        grid_spec=pltpu.PrefetchScalarGridSpec(
            num_scalar_prefetch=0,
            grid=(n_blocks,),
            in_specs=[
                pl.BlockSpec((IN_DIM, tm_eff), lambda i: (0, i)),    # x^T tile
                pl.BlockSpec((HID, IN_DIM), lambda i: (0, 0)),       # w1 (resident)
                pl.BlockSpec((HID, 1), lambda i: (0, 0)),            # b1
                pl.BlockSpec((HID, HID), lambda i: (0, 0)),          # w2
                pl.BlockSpec((HID, 1), lambda i: (0, 0)),            # b2
                pl.BlockSpec((OUT_DIM, HID), lambda i: (0, 0)),      # w3^T
                pl.BlockSpec((OUT_DIM, OUT_DIM), lambda i: (0, 0)),  # b3
            ],
            out_specs=pl.BlockSpec((OUT_DIM, tm_eff), lambda i: (0, i)),
        ),
        compiler_params=pltpu.CompilerParams(
            dimension_semantics=("parallel",)
        ),
    )(xT, w1, b1, w2, b2, w3T, b3)

    # Back to PyTorch's (N, 1) layout, dropping batch padding.
    return out_t[:, :N].T


def init_params(key):
    """Deterministic parameter init (PyTorch Linear-style uniform bounds).

    w1/w2 are stored (out_features, in_features) like PyTorch; fc3's weight
    is stored pre-transposed as (1, 32) so the kernel can feed it straight
    to the MXU. Biases are column vectors (out, 1) so they broadcast over
    the lane (batch) axis inside the kernel.
    """
    ks = jax.random.split(key, 6)

    def uniform(k, shape, fan_in):
        bound = 1.0 / jnp.sqrt(fan_in)
        return jax.random.uniform(k, shape, jnp.float32, -bound, bound)

    w1 = uniform(ks[0], (HID, IN_DIM), IN_DIM)        # (32, 2)
    b1 = uniform(ks[1], (HID, 1), IN_DIM)             # (32, 1)
    w2 = uniform(ks[2], (HID, HID), HID)              # (32, 32)
    b2 = uniform(ks[3], (HID, 1), HID)                # (32, 1)
    w3T = uniform(ks[4], (OUT_DIM, HID), HID)         # (1, 32)
    b3 = uniform(ks[5], (OUT_DIM, OUT_DIM), HID)      # (1, 1)
    return (w1, b1, w2, b2, w3T, b3)


def reference_forward(x, params):
    w1, b1, w2, b2, w3T, b3 = params
    h1 = jax.nn.sigmoid(x @ w1.T + b1.reshape(1, -1))
    h2 = jnp.maximum(h1 @ w2.T + b2.reshape(1, -1), 0.0)
    return h2 @ w3T.T + b3.reshape(1, -1)


if __name__ == "__main__":
    key = jax.random.PRNGKey(0)
    k_params, k_x = jax.random.split(key)

    params = init_params(k_params)

    # Small main case: batch 256 -> auto-picked tm=128, grid length 2
    # (exercises the multi-block path and v7x two-TC sharding).
    N = 256
    x = jax.random.normal(k_x, (N, IN_DIM), dtype=jnp.float32)
    out = jax.block_until_ready(mlp_forward(x, params))
    ref = reference_forward(x, params)
    assert out.shape == (N, OUT_DIM)
    assert jnp.allclose(out, ref, atol=1e-5, rtol=1e-4), (
        float(jnp.max(jnp.abs(out - ref))))

    # Ragged-batch case exercising the padding path (N not a multiple of 128).
    N2 = 100
    x2 = jax.random.normal(jax.random.PRNGKey(1), (N2, IN_DIM), dtype=jnp.float32)
    out2 = jax.block_until_ready(mlp_forward(x2, params))
    ref2 = reference_forward(x2, params)
    assert out2.shape == (N2, OUT_DIM)
    assert jnp.allclose(out2, ref2, atol=1e-5, rtol=1e-4), (
        float(jnp.max(jnp.abs(out2 - ref2))))

    print("KERNEL_OK")
</pallas_src>

<mosaic_0001>
module attributes {stable_mosaic.version = 11 : i64} {
  func.func @mlp_kernel(%arg0: i32, %arg1: memref<2x128xf32, #tpu.memory_space<vmem>>, %arg2: memref<32x2xf32, #tpu.memory_space<vmem>>, %arg3: memref<32x1xf32, #tpu.memory_space<vmem>>, %arg4: memref<32x32xf32, #tpu.memory_space<vmem>>, %arg5: memref<32x1xf32, #tpu.memory_space<vmem>>, %arg6: memref<1x32xf32, #tpu.memory_space<vmem>>, %arg7: memref<1x1xf32, #tpu.memory_space<vmem>>, %arg8: memref<1x128xf32, #tpu.memory_space<vmem>>) attributes {dimension_semantics = [#tpu.dimension_semantics<parallel>], iteration_bounds = array<i64: 2>, scalar_prefetch = 0 : i64, scratch_operands = 0 : i64, tpu.core_type = #tpu.core_type<tc>, window_params = [{transform_indices = @transform_0, window_bounds = array<i64: 2, 128>}, {pipeline_mode = #tpu.pipeline_mode<synchronous>, transform_indices = @transform_1, window_bounds = array<i64: 32, 2>}, {pipeline_mode = #tpu.pipeline_mode<synchronous>, transform_indices = @transform_2, window_bounds = array<i64: 32, 1>}, {pipeline_mode = #tpu.pipeline_mode<synchronous>, transform_indices = @transform_3, window_bounds = array<i64: 32, 32>}, {pipeline_mode = #tpu.pipeline_mode<synchronous>, transform_indices = @transform_4, window_bounds = array<i64: 32, 1>}, {pipeline_mode = #tpu.pipeline_mode<synchronous>, transform_indices = @transform_5, window_bounds = array<i64: 1, 32>}, {pipeline_mode = #tpu.pipeline_mode<synchronous>, transform_indices = @transform_6, window_bounds = array<i64: 1, 1>}, {transform_indices = @transform_7, window_bounds = array<i64: 1, 128>}]} {
    %c0 = arith.constant 0 : index
    %c0_0 = arith.constant 0 : index
    %0 = vector.load %arg1[%c0, %c0_0] : memref<2x128xf32, #tpu.memory_space<vmem>>, vector<2x128xf32>
    %c0_1 = arith.constant 0 : index
    %c0_2 = arith.constant 0 : index
    %1 = vector.load %arg2[%c0_1, %c0_2] : memref<32x2xf32, #tpu.memory_space<vmem>>, vector<32x2xf32>
    %cst = arith.constant dense<0.000000e+00> : vector<32x128xf32>
    %2 = tpu.matmul %1, %0, %cst {dimension_numbers = #tpu.dot_dimension_numbers<[1], [0], [0], [1], [0, 0, 1, 1], [], []>} : vector<32x2xf32>, vector<2x128xf32>, vector<32x128xf32> -> vector<32x128xf32>
    %c0_3 = arith.constant 0 : index
    %c0_4 = arith.constant 0 : index
    %3 = vector.load %arg3[%c0_3, %c0_4] : memref<32x1xf32, #tpu.memory_space<vmem>>, vector<32x1xf32>
    %4 = vector.broadcast %3 : vector<32x1xf32> to vector<32x128xf32>
    %5 = arith.addf %2, %4 : vector<32x128xf32>
    %cst_5 = arith.constant 5.000000e-01 : f32
    %6 = vector.broadcast %cst_5 : f32 to vector<32x128xf32>
    %7 = arith.mulf %6, %5 : vector<32x128xf32>
    %8 = math.tanh %7 : vector<32x128xf32>
    %cst_6 = arith.constant 5.000000e-01 : f32
    %9 = vector.broadcast %cst_6 : f32 to vector<32x128xf32>
    %10 = arith.mulf %9, %8 : vector<32x128xf32>
    %cst_7 = arith.constant 5.000000e-01 : f32
    %11 = vector.broadcast %cst_7 : f32 to vector<32x128xf32>
    %12 = arith.addf %10, %11 : vector<32x128xf32>
    %c0_8 = arith.constant 0 : index
    %c0_9 = arith.constant 0 : index
    %13 = vector.load %arg4[%c0_8, %c0_9] : memref<32x32xf32, #tpu.memory_space<vmem>>, vector<32x32xf32>
    %cst_10 = arith.constant dense<0.000000e+00> : vector<32x128xf32>
    %14 = tpu.matmul %13, %12, %cst_10 {dimension_numbers = #tpu.dot_dimension_numbers<[1], [0], [0], [1], [0, 0, 1, 1], [], []>} : vector<32x32xf32>, vector<32x128xf32>, vector<32x128xf32> -> vector<32x128xf32>
    %c0_11 = arith.constant 0 : index
    %c0_12 = arith.constant 0 : index
    %15 = vector.load %arg5[%c0_11, %c0_12] : memref<32x1xf32, #tpu.memory_space<vmem>>, vector<32x1xf32>
    %16 = vector.broadcast %15 : vector<32x1xf32> to vector<32x128xf32>
    %17 = arith.addf %14, %16 : vector<32x128xf32>
    %cst_13 = arith.constant 0.000000e+00 : f32
    %18 = vector.broadcast %cst_13 : f32 to vector<32x128xf32>
    %19 = arith.maximumf %17, %18 : vector<32x128xf32>
    %c0_14 = arith.constant 0 : index
    %c0_15 = arith.constant 0 : index
    %20 = vector.load %arg6[%c0_14, %c0_15] : memref<1x32xf32, #tpu.memory_space<vmem>>, vector<1x32xf32>
    %cst_16 = arith.constant dense<0.000000e+00> : vector<1x128xf32>
    %21 = tpu.matmul %20, %19, %cst_16 {dimension_numbers = #tpu.dot_dimension_numbers<[1], [0], [0], [1], [0, 0, 1, 1], [], []>} : vector<1x32xf32>, vector<32x128xf32>, vector<1x128xf32> -> vector<1x128xf32>
    %c0_17 = arith.constant 0 : index
    %c0_18 = arith.constant 0 : index
    %22 = vector.load %arg7[%c0_17, %c0_18] : memref<1x1xf32, #tpu.memory_space<vmem>>, vector<1x1xf32>
    %23 = vector.broadcast %22 : vector<1x1xf32> to vector<1x128xf32>
    %24 = arith.addf %21, %23 : vector<1x128xf32>
    %c0_19 = arith.constant 0 : index
    %c0_20 = arith.constant 0 : index
    %25 = vector.load %arg8[%c0_19, %c0_20] : memref<1x128xf32, #tpu.memory_space<vmem>>, vector<1x128xf32>
    tpu.vector_store %arg8[%c0_19, %c0_20], %24 {strides = array<i32>} : memref<1x128xf32, #tpu.memory_space<vmem>>, vector<1x128xf32>,
    return
  }
  func.func @transform_0(%arg0: i32) -> (i32, i32) {
    %c0_i32 = arith.constant 0 : i32
    %c0_i32_0 = arith.constant 0 : i32
    return %c0_i32, %arg0 : i32, i32
  }
  func.func @transform_1(%arg0: i32) -> (i32, i32) {
    %c0_i32 = arith.constant 0 : i32
    %c0_i32_0 = arith.constant 0 : i32
    %c0_i32_1 = arith.constant 0 : i32
    return %c0_i32, %c0_i32_0 : i32, i32
  }
  func.func @transform_2(%arg0: i32) -> (i32, i32) {
    %c0_i32 = arith.constant 0 : i32
    %c0_i32_0 = arith.constant 0 : i32
    %c0_i32_1 = arith.constant 0 : i32
    return %c0_i32, %c0_i32_0 : i32, i32
  }
  func.func @transform_3(%arg0: i32) -> (i32, i32) {
    %c0_i32 = arith.constant 0 : i32
    %c0_i32_0 = arith.constant 0 : i32
    %c0_i32_1 = arith.constant 0 : i32
    return %c0_i32, %c0_i32_0 : i32, i32
  }
  func.func @transform_4(%arg0: i32) -> (i32, i32) {
    %c0_i32 = arith.constant 0 : i32
    %c0_i32_0 = arith.constant 0 : i32
    %c0_i32_1 = arith.constant 0 : i32
    return %c0_i32, %c0_i32_0 : i32, i32
  }
  func.func @transform_5(%arg0: i32) -> (i32, i32) {
    %c0_i32 = arith.constant 0 : i32
    %c0_i32_0 = arith.constant 0 : i32
    %c0_i32_1 = arith.constant 0 : i32
    return %c0_i32, %c0_i32_0 : i32, i32
  }
  func.func @transform_6(%arg0: i32) -> (i32, i32) {
    %c0_i32 = arith.constant 0 : i32
    %c0_i32_0 = arith.constant 0 : i32
    %c0_i32_1 = arith.constant 0 : i32
    return %c0_i32, %c0_i32_0 : i32, i32
  }
  func.func @transform_7(%arg0: i32) -> (i32, i32) {
    %c0_i32 = arith.constant 0 : i32
    %c0_i32_0 = arith.constant 0 : i32
    return %c0_i32, %arg0 : i32, i32
  }
}

</mosaic_0001>

<bundles_post_ra>
// kernel: tpu_custom_call.1
= control target key start
LH: loop header
LB: loop body
LE: loop exit
PB: predicated region body
PF: predicated region fallthrough
CT: control target
= control target key end

     0   :  { %s866_s0 = inlined_call_operand.vmem [shape: f32[2,256], index: 0, kind: input, shape index: {}]   ;;  %s867_s1 = inlined_call_operand.vmem [shape: f32[32,2], index: 1, kind: input, shape index: {}]   ;;  %s868_s2 = inlined_call_operand.vmem [shape: f32[32,1], index: 2, kind: input, shape index: {}]   ;;  %s869_s3 = inlined_call_operand.vmem [shape: f32[32,32], index: 3, kind: input, shape index: {}]   ;;  %s870_s4 = inlined_call_operand.vmem [shape: f32[32,1], index: 4, kind: input, shape index: {}]   ;;  %s871_s5 = inlined_call_operand.vmem [shape: f32[1,32], index: 5, kind: input, shape index: {}]   ;;  %s872_s6 = inlined_call_operand.<no memory space> [shape: f32[1,1], index: 6, kind: input, shape index: {}]   ;;  %s873_s7 = inlined_call_operand.hbm [shape: f32[1,256], index: 7, kind: output, shape index: {}]  }
   0x1   :  { %v12_v0 = vstv %s872_s6 }
   0x2   :  { %13 = vst [vmem:[#allocation2] sm:$0x1] %v12_v0 }
   0x3   :  { %14 = vsyncpa [#allocation4], 0 }
   0x4   :  { %16 = vsyncpa [#allocation4 + $0x1], 0  ;;  %s721_s26 = smov 0   ;;  %s723_s27 = smov 0  }
   0x5   :  { %s725_s28 = smov 0   ;;  %s727_s29 = smov 0  }
   0x6 LB: > { %s742_s6 = sadd.s32 4294967295, %s675_s29   ;;  %s540_s30 = sadd.s32 4294967294, %s675_s29   ;;  %s675_s29 = sphi %s727_s29, %s879_s29   ;;  %s671_s28 = sphi %s725_s28, %s878_s28   ;;  %s667_s27 = sphi %s723_s27, %s877_s27   ;;  %s663_s26 = sphi %s721_s26, %s876_s26  }
   0x7   : > { %s746_s8 = sadd.s32 1, %s675_s29   ;;  %s181_s9 = sadd.s32 1, %s671_s28 }
   0x8   : > { %s178_s10 = ssub.s32 %s675_s29, %s746_s8  ;;  %p191_p0 = scmp.ne.s32.totalorder %s671_s28, %s667_s27 }
   0x9   : > { %p179_p1 = scmp.eq.s32.totalorder %s178_s10, 0  ;;  %p192_p2 = scmp.eq.s32.totalorder %s742_s6, 1 }
   0xa   : > { %p197_p3 = scmp.ne.s32.totalorder %s667_s27, %s663_s26  ;;  %p198_p4 = scmp.eq.s32.totalorder %s540_s30, 1 }
   0xb   : > { %s757_s11 = scalar_select %p179_p1, %s671_s28, %s181_s9  }
   0xc   : > { %p759_p5 = por %p192_p2, %p191_p0  ;;  %p763_p6 = por %p198_p4, %p197_p3 }
   0xd   : > { %p543_p7 = scmp.ge.s32.totalorder %s675_s29, 1  ;;  %p241_p8 = scmp.lt.s32.totalorder %s675_s29, 3 }
   0xf   : > { %p242_p9 = pnand %p543_p7, %p241_p8 }
  0x10   : > { %p271_p10 = scmp.lt.s32.totalorder (!%p242_p9), %s742_s6, 1  ;;  %s269_s23 = sand.u32 (!%p242_p9), 1, %s667_s27  }
  0x11   : > { %245 = sbr.rel (%p242_p9) target bundleno = 478 (0x1de), region = 48  ;;  %s481_s30 = scalar_lea.hbm (!%p242_p9), %s873_s7, %s742_s6 }
  0x12   : > { %s270_s9 = scalar_lea.vmem (!%p242_p9), [#allocation3], %s269_s23  ;;  %s485_s14 = sshll.u32 (!%p242_p9), %s481_s30, 4  ;;  %s486_s14 = int_to_ptr.hbm [resolvable:$true] %s485_s14 }
  0x13   : > { %s483_s10 = sshll.u32 (!%p242_p9), %s270_s9, 4  ;;  %s473_s15 = scalar_lea.sflag (!%p242_p9), [#allocation4], %s269_s23  ;;  %s484_s10 = int_to_ptr.vmem [resolvable:$true] %s483_s10 }
  0x14   : > { %s627_s16 = sshra.s32 (!%p242_p9), %s486_s14, 4  ;;  %s628_s16 = int_to_ptr.hbm [resolvable:$true] %s627_s16 }
  0x15   : > { %s629_s17 = scalar_lea.hbm (!%p242_p9), %s628_s16, 1  ;;  %p634_p0 = scmp.lt.s32.totalorder (!%p242_p9), %s628_s16, %s873_s7 }
  0x16   : > { %v677_v1 = vmov 0   ;;  %v283_v2 = vld [vmem:[%s868_s2 + $0x18] sm:$0xff]  ;;  %v281_v3 = vld [vmem:[%s868_s2 + $0x8] sm:$0xff]  ;;  %s272_s18 = scalar_select %p271_p10, %s742_s6, 1  ;;  %vm317_vm0 = vcmask 1041408   ;;  %v276_v4 = vld [vmem:[%s867_s1] sm:$0xff] }
  0x17   : > { %603 = vset.pattern.permute.xlu1 %v677_v1  ;;  %602 = vset.pattern.permute.xlu0 %v677_v1  ;;  %vm304_vm1 = vcmask 15360   ;;  %v279_v5 = vld [vmem:[%s867_s1 + $0x18] sm:$0xff]  ;;  %v282_v7 = vld [vmem:[%s868_s2 + $0x10] sm:$0xff]  ;;  %v280_v8 = vld [vmem:[%s868_s2] sm:$0xff]  ;;  %vm394_vm2 = vcmask 261120   ;;  %p630_p11 = scmp.ne.s32.totalorder %s628_s16, %s629_s17 }
  0x18   : > { %301 = vperm.xlu0 %602, %v283_v2   ;;  %291 = vperm.xlu1 %603, %v281_v3   ;;  %s544_s19 = sshll.u32 %s272_s18, 1  ;;  %v277_v9 = vld [vmem:[%s867_s1 + $0x8] sm:$0xff]  ;;  %v370_v11 = vld [vmem:[%s870_s4] sm:$0xff]  ;;  %v278_v12 = vld [vmem:[%s867_s1 + $0x10] sm:$0xff] }
  0x19   : > { %604 = vset.pattern.permute.xlu2 %v677_v1  ;;  %s274_s22 = scalar_lea.vmem %s866_s0, %s544_s19  ;;  %v371_v10 = vld [vmem:[%s870_s4 + $0x8] sm:$0xff]  ;;  %v373_v23 = vld [vmem:[%s870_s4 + $0x18] sm:$0xff]  ;;  %v372_v33 = vld [vmem:[%s870_s4 + $0x10] sm:$0xff]  ;;  %p631_p12 = pnand %p630_p11, %p759_p5 }
  0x1a   : > { %v275_v6 = vld [vmem:[%s274_s22] sm:$0x3]  ;;  %391 = vperm.xlu2 %604, %v373_v23   ;;  %v368_v45 = vld [vmem:[%s869_s3 + $0x10] sm:$0xff]  ;;  %v367_v46 = vld [vmem:[%s869_s3 + $0x8] sm:$0xff]  ;;  %s633_s19 = scalar_lea.hbm %s873_s7, 2 }
  0x1b   : > { %545 = vmatpush.msk.msra.mxu0 %vm317_vm0, %v275_v6  ;;  %557 = vmatpush.msk.msra.mxu2 %vm317_vm0, %v275_v6  ;;  %v441_v39 = vld [vmem:[#allocation2] sm:$0x1]  ;;  %v369_v47 = vld [vmem:[%s869_s3 + $0x18] sm:$0xff]  ;;  %p632_p13 = pneg %p631_p12  ;;  %p635_p1 = scmp.lt.s32.totalorder %s633_s19, %s629_s17 }
  0x1c   : > { %546 = vmatmul.msk.f32.vlgmr.msra.gmra.mxu0 %vm304_vm1, %v276_v4  ;;  %549 = vmatmul.msk.f32.vlgmr.msra.gmra.mxu2 %vm304_vm1, %v279_v5  ;;  %v366_v44 = vld [vmem:[%s869_s3] sm:$0xff] }
  0x1d   : > { %v440_v0 = vld [vmem:[%s871_s5] sm:$0x1]  ;;  %p636_p2 = por %p635_p1, %p634_p0 }
  0x1f   : > { %p637_p3 = pnand %p636_p2, %p632_p13 }
  0x20   : > { %296 = vperm.xlu0 %602, %v282_v7   ;;  %286 = vperm.xlu1 %603, %v280_v8  }
  0x22   : > { %386 = vperm.xlu2 %604, %v372_v33  }
  0x24   : > { %547 = vmatmul.msk.f32.gmra.mxu0 %vm304_vm1, %v277_v9 }
  0x28   : > { %381 = vperm.xlu0 %602, %v371_v10   ;;  %376 = vperm.xlu1 %603, %v370_v11  }
  0x2a   : > { %444 = vperm.xlu2 %604, %v441_v39  }
  0x2c   : > { %548 = vmatmul.msk.f32.gmra.mxu0 %vm304_vm1, %v278_v12 }
  0x74   : > { %v392_v48 = vpop.permute.xlu2 %391 }
  0x7c   : > { %v387_v51 = vpop.permute.xlu2 %386 }
  0x84   : > { %v445_v1 = vpop.permute.xlu2 %444 }
  0x85   : > { %v447_v2 = vperm.slane %v445_v1, 0 }
  0x8a   : > { %v292_v13 = vpop.permute.xlu1 %291  ;;  %v302_v15 = vpop.permute.xlu0 %301 }
  0x92   : > { %v287_v19 = vpop.permute.xlu1 %286  ;;  %v297_v25 = vpop.permute.xlu0 %296 }
  0x99   : > { %v338_v14 = vpop.f32.mrf.mxu0 }
  0x9a   : > { %v339_v22 = vadd.f32 %v338_v14, %v287_v19  ;;  %v382_v56 = vpop.permute.xlu0 %381  ;;  %v377_v59 = vpop.permute.xlu1 %376 }
  0x9c   : > { %v350_v26 = vmul.f32 0.5, %v339_v22 }
  0x9f   : > { %v347_v16 = vpop.f32.mrf.mxu2 }
  0xa0   : > { %v348_v17 = vadd.f32 %v347_v16, %v302_v15 }
  0xa1   : > { %v341_v18 = vpop.f32.mrf.mxu0 }
  0xa2   : > { %v353_v20 = vmul.f32 0.5, %v348_v17  ;;  %v342_v21 = vadd.f32 %v341_v18, %v292_v13 }
  0xa4   : > { %605 = vtanh.f32 %v353_v20  ;;  %v351_v24 = vmul.f32 0.5, %v342_v21 }
  0xa6   : > { %607 = vtanh.f32 %v351_v24 }
  0xa7   : > { %609 = vtanh.f32 %v350_v26 }
  0xa9   : > { %v344_v27 = vpop.f32.mrf.mxu0 }
  0xaa   : > { %v606_v28 = vpop.eup %605  ;;  %v345_v29 = vadd.f32 %v344_v27, %v297_v25 }
  0xab   : > { %v361_v30 = vmul.f32 0.5, %v606_v28 }
  0xac   : > { %v352_v31 = vmul.f32 0.5, %v345_v29  ;;  %v608_v34 = vpop.eup %607 }
  0xad   : > { %v365_v32 = vadd.f32 0.5, %v361_v30  ;;  %v610_v35 = vpop.eup %609  ;;  %v359_v38 = vmul.f32 0.5, %v608_v34 }
  0xae   : > { %611 = vtanh.f32 %v352_v31  ;;  %v358_v41 = vmul.f32 0.5, %v610_v35 }
  0xaf   : > { %419 = vmatpush.msra.mxu1 %v365_v32  ;;  %558 = vmatpush.msra.mxu3 %v365_v32  ;;  %v363_v42 = vadd.f32 0.5, %v359_v38 }
  0xb0   : > { %v362_v43 = vadd.f32 0.5, %v358_v41 }
  0xb4   : > { %v612_v36 = vpop.eup %611 }
  0xb5   : > { %v360_v37 = vmul.f32 0.5, %v612_v36 }
  0xb7   : > { %v364_v40 = vadd.f32 0.5, %v360_v37 }
  0xb9   : > { %420 = vmatpush.msra.mxu1 %v364_v40  ;;  %559 = vmatpush.msra.mxu3 %v364_v40 }
  0xbb   : > { %421 = vmatpush.msra.mxu1 %v363_v42  ;;  %560 = vmatpush.msra.mxu3 %v363_v42 }
  0xbd   : > { %422 = vmatpush.msra.mxu1 %v362_v43  ;;  %561 = vmatpush.msra.mxu3 %v362_v43 }
  0xbe   : > { %550 = vmatmul.msk.f32.vlgmr.msra.gmra.mxu1 %vm394_vm2, %v366_v44  ;;  %552 = vmatmul.msk.f32.vlgmr.msra.gmra.mxu3 %vm394_vm2, %v368_v45 }
  0xc6   : > { %551 = vmatmul.msk.f32.gmra.mxu1 %vm394_vm2, %v367_v46  ;;  %553 = vmatmul.msk.f32.gmra.mxu3 %vm394_vm2, %v369_v47 }
 0x13b   : > { %v424_v49 = vpop.f32.mrf.mxu1 }
 0x13c   : > { %v425_v60 = vadd.f32 %v424_v49, %v377_v59 }
 0x13e   : > { %v436_v63 = vmax.f32 %v425_v60, 0.0 }
 0x141   : > { %v430_v50 = vpop.f32.mrf.mxu3 }
 0x142   : > { %v431_v54 = vadd.f32 %v430_v50, %v387_v51 }
 0x143   : > { %v427_v52 = vpop.f32.mrf.mxu1 }
 0x144   : > { %v428_v57 = vadd.f32 %v427_v52, %v382_v56  ;;  %v438_v61 = vmax.f32 %v431_v54, 0.0 }
 0x146   : > { %v437_v62 = vmax.f32 %v428_v57, 0.0 }
 0x149   : > { %v433_v53 = vpop.f32.mrf.mxu3 }
 0x14a   : > { %v434_v55 = vadd.f32 %v433_v53, %v392_v48 }
 0x14c   : > { %v439_v58 = vmax.f32 %v434_v55, 0.0 }
 0x14e   : > { %463 = vmatpush.msrb.mxu2 %v439_v58 }
 0x150   : > { %464 = vmatpush.msrb.mxu2 %v438_v61 }
 0x152   : > { %465 = vmatpush.msrb.mxu2 %v437_v62 }
 0x154   : > { %466 = vmatpush.msrb.mxu2 %v436_v63 }
 0x155   : > { %554 = vmatmul.msk.f32.vlgmr.msrb.gmra.mxu2 %vm394_vm2, %v440_v0 }
 0x1d8   : > { %v468_v3 = vpop.f32.mrf.mxu2 }
 0x1d9   : > { %v469_v4 = vadd.f32 %v468_v3, %v447_v2 }
 0x1db   : > { %471 = vst [vmem:[%s270_s9] sm:$0x1] %v469_v4 }
 0x1dc   : > { %640 = shalt.err (!%p637_p3)
}
 0x1dd   : > { %562 = dma.vmem_to_hbm [thread:$0]  (%p759_p5), %s484_s10, 16, %s486_s14, %s473_s15  }
 0x1de PF: > { %p568_p4 = scmp.ge.s32.totalorder %s675_s29, 2  ;;  %s497_s22 = sand.u32 1, %s663_s26  }
 0x1df   : > { %s498_s23 = scalar_lea.sflag [#allocation4], %s497_s22 }
 0x1e0   : > { %p565_p7 = pnand %p568_p4, %p763_p6 }
 0x1e2   : > { %p566_p8 = pneg %p565_p7 }
 0x1e4   : > { %658 = dma.done.wait (%p566_p8), %s498_s23, 16  }
 0x1e5   : > { %660 = vsyncadd (%p566_p8), %s498_s23, 4294967280  ;;  %p19_p9 = scmp.ge.s32.totalorder %s746_s8, 4   ;;  %s876_s26 = smov %s667_s27 }
 0x1e6   : > { %s877_s27 = smov %s671_s28  ;;  %s878_s28 = smov %s757_s11 }
 0x1e7   : > { %s879_s29 = smov %s746_s8  ;;  %21 = sbr.rel (!%p19_p9) target bundleno = 6 (0x6), region = 83 }
 0x1ec   :  { %503 = vsyncpa [#allocation4], 1 }
 0x1ed   :  { %505 = vsyncpa [#allocation4 + $0x1], 1 }

</bundles_post_ra>
